<compile_context>
chip_gen: v6e
topology: v6e:2x2x1
jax: 0.10.0
libtpu: 0.0.40
codegen_flags: <defaults>
</compile_context>

<pallas_src>
from functools import partial

import jax
import jax.numpy as jnp
from jax.experimental import pallas as pl
from jax.experimental.pallas import tpu as pltpu


def _pick_tile(n, max_tile, mult):
    """Largest t <= max_tile with t % mult == 0 and n % t == 0; else full n."""
    if n <= max_tile:
        return n
    start = max_tile - (max_tile % mult)
    for t in range(start, 0, -mult):
        if n % t == 0:
            return t
    return n  # full dim is always a legal block shape


def _compiler_params(vmem_estimate_bytes):
    kwargs = {"dimension_semantics": ("parallel",)}
    # Raise the scoped VMEM limit only when the resident-Laplacian design needs
    # it (v5e default 16 MiB / v6e 32 MiB); cap at 64 MiB so v7x stays legal.
    if vmem_estimate_bytes > 16 * 1024 * 1024:
        kwargs["vmem_limit_bytes"] = min(int(vmem_estimate_bytes * 1.25),
                                         64 * 1024 * 1024)
    return pltpu.CompilerParams(**kwargs)


def _cheb_terms_kernel(lap_ref, x_ref, xs_ref, *, num_weights, offset):
    """Chebyshev recursion on one column tile (batch folded into columns).

    lap_ref : (V, V)      dense Laplacian, resident across grid steps
    x_ref   : (V, Ct)     column tile of x0 = x.transpose(1,2,0).reshape(V, Fin*B)
    xs_ref  : (K, V, Ct)  T_{k+offset} stored at slot k
    """
    lap = lap_ref[...]
    t0 = x_ref[...]
    highest = num_weights - 1 + offset  # highest Chebyshev order needed

    if offset == 0:
        xs_ref[0] = t0.astype(xs_ref.dtype)
    if highest >= 1:
        t1 = jnp.dot(lap, t0, preferred_element_type=jnp.float32)
        xs_ref[1 - offset] = t1.astype(xs_ref.dtype)
        t_prev2, t_prev1 = t0.astype(jnp.float32), t1
        for order in range(2, highest + 1):  # static unroll; K is small
            t_cur = (2.0 * jnp.dot(lap, t_prev1.astype(lap.dtype),
                                   preferred_element_type=jnp.float32)
                     - t_prev2)
            xs_ref[order - offset] = t_cur.astype(xs_ref.dtype)
            t_prev2, t_prev1 = t_prev1, t_cur


def _contract_kernel(xf_ref, w_ref, b_ref, o_ref):
    """One row tile of the fused (B*V, Fin*K) @ (Fin*K, Fout) contraction."""
    acc = jnp.dot(xf_ref[...], w_ref[...], preferred_element_type=jnp.float32)
    o_ref[...] = (acc + b_ref[...].astype(jnp.float32)).astype(o_ref.dtype)


def cheb_conv(laplacian, x, weight, bias=None, *, skip=False):
    """laplacian: (V,V) dense; x: (B,V,Fin); weight: (Fin,K,Fout); bias: (Fout,) or None."""
    B, V, Fin = x.shape
    Fin_w, K, Fout = weight.shape
    assert Fin_w == Fin, (Fin_w, Fin)
    offset = 1 if skip else 0
    itemsize = jnp.dtype(x.dtype).itemsize

    # ---- Stage 1: Chebyshev recursion with batch folded into columns -------
    C = Fin * B
    x0 = jnp.transpose(x, (1, 2, 0)).reshape(V, C)  # column index = fin*B + b
    tc = _pick_tile(C, 512, 128)                     # lane-dense column tile
    vmem_est1 = itemsize * (2 * V * V + 2 * V * tc + 2 * K * V * tc)
    xs = pl.pallas_call(
        partial(_cheb_terms_kernel, num_weights=K, offset=offset),
        out_shape=jax.ShapeDtypeStruct((K, V, C), x.dtype),
        grid=(C // tc,),
        in_specs=[
            pl.BlockSpec((V, V), lambda c: (0, 0)),      # Laplacian: resident
            pl.BlockSpec((V, tc), lambda c: (0, c)),     # x0 column tile
        ],
        out_specs=pl.BlockSpec((K, V, tc), lambda c: (0, 0, c)),
        compiler_params=_compiler_params(vmem_est1),
    )(laplacian, x0)

    # ---- Layout plumbing (XLA): (K,V,Fin,B) -> (B*V, Fin*K) ----------------
    xf = jnp.transpose(xs.reshape(K, V, Fin, B), (3, 1, 2, 0)).reshape(B * V, Fin * K)
    w2 = weight.reshape(Fin * K, Fout)               # row index = fin*K + k
    if bias is None:
        bias2d = jnp.zeros((1, Fout), x.dtype)
    else:
        bias2d = jnp.asarray(bias, x.dtype).reshape(1, Fout)

    # ---- Stage 2: single fused contraction + bias ---------------------------
    M = B * V
    FK = Fin * K
    tm = _pick_tile(M, 512, 8)
    vmem_est2 = itemsize * (2 * tm * FK + 2 * FK * Fout + 2 * tm * Fout + Fout)
    out = pl.pallas_call(
        _contract_kernel,
        out_shape=jax.ShapeDtypeStruct((M, Fout), x.dtype),
        grid=(M // tm,),
        in_specs=[
            pl.BlockSpec((tm, FK), lambda m: (m, 0)),    # row tile of features
            pl.BlockSpec((FK, Fout), lambda m: (0, 0)),  # weights: resident
            pl.BlockSpec((1, Fout), lambda m: (0, 0)),   # bias: resident
        ],
        out_specs=pl.BlockSpec((tm, Fout), lambda m: (m, 0)),
        compiler_params=_compiler_params(vmem_est2),
    )(xf, w2, bias2d)
    return out.reshape(B, V, Fout)


def _cheb_conv_ref(laplacian, x, weight, bias, skip):
    """Pure-JAX port of the PyTorch cheb_conv reference."""
    B, V, Fin = x.shape
    _, K, Fout = weight.shape
    x0 = jnp.transpose(x, (1, 2, 0)).reshape(V, Fin * B)
    terms = [x0]
    Kp = K + 1 if skip else K
    x1 = None
    if Kp > 1:
        x1 = laplacian @ x0
        terms.append(x1)
    for _ in range(2, Kp):
        x2 = 2 * (laplacian @ x1) - x0
        terms.append(x2)
        x0, x1 = x1, x2
    xs = jnp.stack(terms, 0)
    if skip:
        xs = xs[1:]
    xs = xs.reshape(K, V, Fin, B)
    xs = jnp.transpose(xs, (3, 1, 2, 0)).reshape(B * V, Fin * K)
    out = xs @ weight.reshape(Fin * K, Fout)
    out = out.reshape(B, V, Fout)
    if bias is not None:
        out = out + bias
    return out


if __name__ == "__main__":
    B, V, Fin, K, Fout = 2, 16, 4, 3, 8

    key = jax.random.PRNGKey(0)
    k_lap, k_x, k_w, k_b = jax.random.split(key, 4)

    r = jax.random.normal(k_lap, (V, V), jnp.float32)
    laplacian = (r + r.T) / (2.0 * jnp.sqrt(V))          # dense symmetric "Laplacian"
    x = jax.random.normal(k_x, (B, V, Fin), jnp.float32)
    weight = jax.random.normal(k_w, (Fin, K, Fout), jnp.float32) * 0.1
    bias = jax.random.normal(k_b, (Fout,), jnp.float32) * 0.1

    ok = True
    for skip in (False, True):
        out = cheb_conv(laplacian, x, weight, bias, skip=skip)
        out = jax.block_until_ready(out)
        ref = _cheb_conv_ref(laplacian, x, weight, bias, skip)
        assert out.shape == (B, V, Fout), out.shape
        assert out.dtype == x.dtype
        ok &= bool(jnp.allclose(out, ref, atol=1e-4, rtol=1e-4))

    assert ok, "mismatch vs pure-JAX ChebConv reference"
    print("KERNEL_OK")
</pallas_src>

<mosaic_0001>
module attributes {stable_mosaic.version = 11 : i64} {
  func.func @_cheb_terms_kernel(%arg0: i32, %arg1: memref<16x16xf32, #tpu.memory_space<vmem>>, %arg2: memref<16x8xf32, #tpu.memory_space<vmem>>, %arg3: memref<3x16x8xf32, #tpu.memory_space<vmem>>) attributes {dimension_semantics = [#tpu.dimension_semantics<parallel>], iteration_bounds = array<i64: 1>, scalar_prefetch = 0 : i64, scratch_operands = 0 : i64, tpu.core_type = #tpu.core_type<tc>, window_params = [{pipeline_mode = #tpu.pipeline_mode<synchronous>, transform_indices = @transform_0, window_bounds = array<i64: 16, 16>}, {transform_indices = @transform_1, window_bounds = array<i64: 16, 8>}, {transform_indices = @transform_2, window_bounds = array<i64: 3, 16, 8>}]} {
    %c0 = arith.constant 0 : index
    %c0_0 = arith.constant 0 : index
    %0 = vector.load %arg1[%c0, %c0_0] : memref<16x16xf32, #tpu.memory_space<vmem>>, vector<16x16xf32>
    %c0_1 = arith.constant 0 : index
    %c0_2 = arith.constant 0 : index
    %1 = vector.load %arg2[%c0_1, %c0_2] : memref<16x8xf32, #tpu.memory_space<vmem>>, vector<16x8xf32>
    %c0_3 = arith.constant 0 : index
    %c0_4 = arith.constant 0 : index
    %c0_5 = arith.constant 0 : index
    %2 = vector.load %arg3[%c0_3, %c0_4, %c0_5] : memref<3x16x8xf32, #tpu.memory_space<vmem>>, vector<1x16x8xf32>
    %3 = vector.shape_cast %2 : vector<1x16x8xf32> to vector<16x8xf32>
    %4 = vector.shape_cast %1 : vector<16x8xf32> to vector<1x16x8xf32>
    tpu.vector_store %arg3[%c0_3, %c0_4, %c0_5], %4 {strides = array<i32>} : memref<3x16x8xf32, #tpu.memory_space<vmem>>, vector<1x16x8xf32>,
    %cst = arith.constant dense<0.000000e+00> : vector<16x8xf32>
    %5 = tpu.matmul %0, %1, %cst {dimension_numbers = #tpu.dot_dimension_numbers<[1], [0], [0], [1], [0, 0, 1, 1], [], []>} : vector<16x16xf32>, vector<16x8xf32>, vector<16x8xf32> -> vector<16x8xf32>
    %c1 = arith.constant 1 : index
    %c0_6 = arith.constant 0 : index
    %c0_7 = arith.constant 0 : index
    %6 = vector.load %arg3[%c1, %c0_6, %c0_7] : memref<3x16x8xf32, #tpu.memory_space<vmem>>, vector<1x16x8xf32>
    %7 = vector.shape_cast %6 : vector<1x16x8xf32> to vector<16x8xf32>
    %8 = vector.shape_cast %5 : vector<16x8xf32> to vector<1x16x8xf32>
    tpu.vector_store %arg3[%c1, %c0_6, %c0_7], %8 {strides = array<i32>} : memref<3x16x8xf32, #tpu.memory_space<vmem>>, vector<1x16x8xf32>,
    %cst_8 = arith.constant dense<0.000000e+00> : vector<16x8xf32>
    %9 = tpu.matmul %0, %5, %cst_8 {dimension_numbers = #tpu.dot_dimension_numbers<[1], [0], [0], [1], [0, 0, 1, 1], [], []>} : vector<16x16xf32>, vector<16x8xf32>, vector<16x8xf32> -> vector<16x8xf32>
    %cst_9 = arith.constant 2.000000e+00 : f32
    %10 = vector.broadcast %cst_9 : f32 to vector<16x8xf32>
    %11 = arith.mulf %10, %9 : vector<16x8xf32>
    %12 = arith.subf %11, %1 : vector<16x8xf32>
    %c2 = arith.constant 2 : index
    %c0_10 = arith.constant 0 : index
    %c0_11 = arith.constant 0 : index
    %13 = vector.load %arg3[%c2, %c0_10, %c0_11] : memref<3x16x8xf32, #tpu.memory_space<vmem>>, vector<1x16x8xf32>
    %14 = vector.shape_cast %13 : vector<1x16x8xf32> to vector<16x8xf32>
    %15 = vector.shape_cast %12 : vector<16x8xf32> to vector<1x16x8xf32>
    tpu.vector_store %arg3[%c2, %c0_10, %c0_11], %15 {strides = array<i32>} : memref<3x16x8xf32, #tpu.memory_space<vmem>>, vector<1x16x8xf32>,
    return
  }
  func.func @transform_0(%arg0: i32) -> (i32, i32) {
    %c0_i32 = arith.constant 0 : i32
    %c0_i32_0 = arith.constant 0 : i32
    %c0_i32_1 = arith.constant 0 : i32
    return %c0_i32, %c0_i32_0 : i32, i32
  }
  func.func @transform_1(%arg0: i32) -> (i32, i32) {
    %c0_i32 = arith.constant 0 : i32
    %c0_i32_0 = arith.constant 0 : i32
    return %c0_i32, %arg0 : i32, i32
  }
  func.func @transform_2(%arg0: i32) -> (i32, i32, i32) {
    %c0_i32 = arith.constant 0 : i32
    %c0_i32_0 = arith.constant 0 : i32
    %c0_i32_1 = arith.constant 0 : i32
    return %c0_i32, %c0_i32_0, %arg0 : i32, i32, i32
  }
}

</mosaic_0001>

<bundles_post_ra>
// kernel: tpu_custom_call.1
= control target key start
LH: loop header
LB: loop body
LE: loop exit
PB: predicated region body
PF: predicated region fallthrough
CT: control target
= control target key end

     0   :  { %vm18_vm0 = vcmask 130048   ;;  %vm15_vm1 = vcmask 64512   ;;  %s274_s1 = inlined_call_operand.vmem [shape: f32[16,8], index: 1, kind: input, shape index: {}]   ;;  %s275_s0 = inlined_call_operand.vmem [shape: f32[16,16], index: 0, kind: input, shape index: {}]   ;;  %s276_s2 = inlined_call_operand.vmem [shape: f32[3,16,8], index: 2, kind: output, shape index: {}]  }
   0x1   :  { %v14_v0 = vld [vmem:[%s274_s1 + $0x8] sm:$0xff]  ;;  %v13_v1 = vld [vmem:[%s274_s1] sm:$0xff] }
   0x2   :  { %v11_v2 = vld [vmem:[%s275_s0] sm:$0xff]  ;;  %17 = vst.msk [vmem:[%s276_s2 + $0x8] sm:$0xff] %vm15_vm1, %v14_v0  ;;  %205 = vmatprep.subr.mxu0 %v14_v0  ;;  %16 = vst.msk [vmem:[%s276_s2] sm:$0xff] %vm15_vm1, %v13_v1  ;;  %v12_v3 = vld [vmem:[%s275_s0 + $0x8] sm:$0xff] }
   0x3   :  { %209 = vmatprep.mubr.msk.f32.mxu0 %vm18_vm0, %v11_v2  ;;  %206 = vmatpush3.msra.mxu0 %v14_v0 }
   0x4   :  { %216 = vmatprep.mubr.msk.f32.mxu1 %vm18_vm0, %v11_v2  ;;  %207 = vmatprep.subr.mxu0 %v13_v1 }
   0x5   :  { %208 = vmatpush3.msra.mxu0 %v13_v1 }
   0x6   :  { %210 = vmatmul.mubr.msk.f32.vlgmr.msra.gmra.mxu0 %vm18_vm0, %v12_v3 }
  0xc6   :  { %v211_v4 = vpop.f32.mrf.mxu0 }
  0xc7   :  { %192 = vst.msk [vmem:[%s276_s2 + $0x18] sm:$0xff] %vm15_vm1, %v211_v4  ;;  %212 = vmatprep.subr.mxu1 %v211_v4 }
  0xc8   :  { %v91_v5 = vpop.f32.mrf.mxu0  ;;  %213 = vmatpush3.msra.mxu1 %v211_v4 }
  0xc9   :  { %191 = vst.msk [vmem:[%s276_s2 + $0x10] sm:$0xff] %vm15_vm1, %v91_v5  ;;  %214 = vmatprep.subr.mxu1 %v91_v5 }
  0xca   :  { %215 = vmatpush3.msra.mxu1 %v91_v5 }
  0xcb   :  { %217 = vmatmul.mubr.msk.f32.vlgmr.msra.gmra.mxu1 %vm18_vm0, %v12_v3 }
 0x18b   :  { %v218_v6 = vpop.f32.mrf.mxu1 }
 0x18c   :  { %v179_v7 = vmul.f32 2.0, %v218_v6 }
 0x18d   :  { %v169_v8 = vpop.f32.mrf.mxu1 }
 0x18e   :  { %v181_v9 = vsub.f32 %v179_v7, %v14_v0  ;;  %v178_v10 = vmul.f32 2.0, %v169_v8 }
 0x190   :  { %196 = vst.msk [vmem:[%s276_s2 + $0x28] sm:$0xff] %vm15_vm1, %v181_v9  ;;  %v180_v11 = vsub.f32 %v178_v10, %v13_v1 }
 0x192   :  { %195 = vst.msk [vmem:[%s276_s2 + $0x20] sm:$0xff] %vm15_vm1, %v180_v11 }

</bundles_post_ra>
